<compile_context>
chip_gen: v7x
topology: tpu7x:2x2x1
jax: 0.10.0
libtpu: 0.0.40
codegen_flags: <defaults>
</compile_context>

<pallas_src>
import functools

import numpy as np
import jax
import jax.numpy as jnp
from jax import lax
from jax.experimental import pallas as pl
from jax.experimental.pallas import tpu as pltpu


def _round_up(n, m):
    return ((n + m - 1) // m) * m


def _pick_batch_block(B):
    if B <= 8:
        return B
    for cand in (512, 256, 128, 64, 32, 16, 8):
        if B % cand == 0:
            return cand
    return B


# ----------------------------------------------------------------------------
# Fused kernel: conv position m -> FC partial sum -> (last step) heads.
#   grid = (batch_blocks, M1=Ho*Wo);  m axis is a reduction ("arbitrary").
# ----------------------------------------------------------------------------
def _policy_fused_kernel(x_ref, wconv_ref, bconv_ref, wfc_ref, bfc_ref,
                         whead_ref, bhead_ref, feats_ref, heads_ref, acc_ref):
    m = pl.program_id(1)

    @pl.when(m == 0)
    def _():
        acc_ref[...] = jnp.zeros_like(acc_ref)

    # Conv at output position m for the whole batch block: one MXU matmul.
    # int8 patches -> bf16 in a single cast (exact for -128..127); f32 acc.
    x = x_ref[0].astype(jnp.bfloat16)                          # (bblk, Kp)
    conv = jnp.dot(x, wconv_ref[...], preferred_element_type=jnp.float32)
    conv = jnp.maximum(conv + bconv_ref[...], 0.0)             # (bblk, F) f32

    # FC partial sum with the position-m weight slice (streamed via BlockSpec).
    acc_ref[...] += jnp.dot(conv.astype(jnp.bfloat16), wfc_ref[0],
                            preferred_element_type=jnp.float32)

    @pl.when(m == pl.num_programs(1) - 1)
    def _():
        h = jnp.maximum(acc_ref[...] + bfc_ref[...], 0.0)      # (bblk, Hp) f32
        feats_ref[...] = h
        heads_ref[...] = (jnp.dot(h.astype(jnp.bfloat16), whead_ref[...],
                                  preferred_element_type=jnp.float32)
                          + bhead_ref[...])                     # (bblk, NHp)


# ----------------------------------------------------------------------------
# im2col on the ORIGINAL (B,H,W,S,C) layout (no obs transpose at runtime).
# Columns ordered (kh, kw, s, c); positions leading so each grid step's slab
# is contiguous in HBM.
# ----------------------------------------------------------------------------
def im2col_positions_first(x, k, stride):
    B, H, W, S, C = x.shape
    Ho = (H - k) // stride + 1
    Wo = (W - k) // stride + 1
    cols = []
    for i in range(k):
        for j in range(k):
            cols.append(x[:, i:i + stride * Ho:stride,
                             j:j + stride * Wo:stride, :, :])   # (B,Ho,Wo,S,C)
    p = jnp.stack(cols, axis=3)                                 # (B,Ho,Wo,k*k,S,C)
    p = p.reshape(B, Ho * Wo, k * k * S * C)
    return jnp.transpose(p, (1, 0, 2)), Ho, Wo                  # (M1, B, K)


# ----------------------------------------------------------------------------
# Deterministic PyTorch-layout parameters (synthetic base + Categorical head).
# ----------------------------------------------------------------------------
def init_params(key, in_ch, k, n_filters, conv_out_dim, hidden, n_actions):
    ks = jax.random.split(key, 8)
    s = lambda fan_in: 1.0 / jnp.sqrt(jnp.float32(fan_in))
    return {
        "conv_w": jax.random.normal(ks[0], (n_filters, in_ch, k, k),
                                    jnp.float32) * s(in_ch * k * k),
        "conv_b": jax.random.normal(ks[1], (n_filters,), jnp.float32) * 0.01,
        "fc_w":   jax.random.normal(ks[2], (conv_out_dim, hidden),
                                    jnp.float32) * s(conv_out_dim),
        "fc_b":   jax.random.normal(ks[3], (hidden,), jnp.float32) * 0.01,
        "val_w":  jax.random.normal(ks[4], (hidden, 1), jnp.float32) * s(hidden),
        "val_b":  jax.random.normal(ks[5], (1,), jnp.float32) * 0.01,
        "pi_w":   jax.random.normal(ks[6], (hidden, n_actions),
                                    jnp.float32) * s(hidden),
        "pi_b":   jax.random.normal(ks[7], (n_actions,), jnp.float32) * 0.01,
    }


# ----------------------------------------------------------------------------
# One-time weight prep (free at init): fold 1/255 + u8 shift, reorder conv
# columns to the natural obs layout, re-block the FC weight per position,
# fuse + lane-pad the heads, cast matmul operands to bf16.
# ----------------------------------------------------------------------------
def prepare_params(params, *, k, S, C, Ho, Wo):
    F = params["conv_w"].shape[0]
    K = k * k * S * C
    Kp = _round_up(K, 128)
    M1 = Ho * Wo
    hidden = params["fc_w"].shape[1]
    Hp = _round_up(hidden, 128)
    n_actions = params["pi_w"].shape[1]
    NHp = _round_up(1 + n_actions, 128)

    # Conv: (F, C*S, kh, kw) -> rows ordered (kh, kw, s, c) to match the
    # natural (H,W,S,C) patch layout; fold 1/255; bf16; zero-pad K rows.
    w = params["conv_w"].reshape(F, C, S, k, k)                  # [f,c,s,kh,kw]
    w = jnp.transpose(w, (3, 4, 2, 1, 0)).reshape(K, F) / 255.0  # (K, F)
    w_conv = w.astype(jnp.bfloat16)
    w_conv_p = jnp.zeros((Kp, F), jnp.bfloat16).at[:K, :].set(w_conv)
    # +128*colsum compensates the uint8 -> int8 (x-128) shift; computed from
    # the bf16-rounded weights actually used by the MXU, so the shift is exact.
    b_conv = (params["conv_b"]
              + 128.0 * jnp.sum(w_conv.astype(jnp.float32), axis=0)
              ).reshape(1, F).astype(jnp.float32)

    # FC: PyTorch flatten order is (f, ho, wo); re-block to (M1, F, Hp) so the
    # kernel streams the position-m slice per grid step.  Padded hidden cols
    # are zero (bias 0) -> stay zero through ReLU and the zero head rows.
    wfc = params["fc_w"].reshape(F, M1, hidden).transpose(1, 0, 2)  # (M1,F,h)
    w_fc = jnp.zeros((M1, F, Hp), jnp.bfloat16).at[:, :, :hidden].set(
        wfc.astype(jnp.bfloat16))
    b_fc = jnp.zeros((1, Hp), jnp.float32).at[0, :hidden].set(params["fc_b"])

    # Heads: col 0 = value, cols 1..n_actions = logits, zero-padded to a
    # lane-dense 128-wide output (unmasked vst).
    w_head = jnp.zeros((Hp, NHp), jnp.bfloat16)
    w_head = w_head.at[:hidden, 0:1].set(params["val_w"].astype(jnp.bfloat16))
    w_head = w_head.at[:hidden, 1:1 + n_actions].set(
        params["pi_w"].astype(jnp.bfloat16))
    b_head = jnp.zeros((1, NHp), jnp.float32)
    b_head = b_head.at[0, 0].set(params["val_b"][0])
    b_head = b_head.at[0, 1:1 + n_actions].set(params["pi_b"])

    return {"conv_w": w_conv_p, "conv_b": b_conv,
            "fc_w": w_fc, "fc_b": b_fc,
            "head_w": w_head, "head_b": b_head}


# ----------------------------------------------------------------------------
# Policy forward: obs -> (value, actor_features, logits, greedy action)
# ----------------------------------------------------------------------------
def policy_forward(p, obs_u8, *, k, stride, hidden, n_actions):
    B = obs_u8.shape[0]
    Kp, F = p["conv_w"].shape
    M1, _, Hp = p["fc_w"].shape
    NHp = p["head_w"].shape[1]

    # uint8 -> int8 shift (x - 128) as XOR 0x80 + bitcast: one 8-bit pass that
    # fuses into the im2col gather (no int32 blow-up, no layout transpose).
    x_i8 = lax.bitcast_convert_type(obs_u8 ^ jnp.uint8(0x80), jnp.int8)

    patches, Ho, Wo = im2col_positions_first(x_i8, k, stride)   # (M1, B, K) i8
    assert M1 == Ho * Wo
    K = patches.shape[-1]
    if K != Kp:
        patches = jnp.pad(patches, ((0, 0), (0, 0), (0, Kp - K)))

    bblk = _pick_batch_block(B)
    n_bblk = B // bblk

    flops = 2 * B * M1 * (Kp * F + F * Hp) + 2 * B * Hp * NHp
    bytes_accessed = (patches.size
                      + 2 * (p["conv_w"].size + p["fc_w"].size + p["head_w"].size)
                      + 4 * (B * (Hp + NHp) + F + Hp + NHp))

    feats_p, heads = pl.pallas_call(
        _policy_fused_kernel,
        out_shape=(jax.ShapeDtypeStruct((B, Hp), jnp.float32),
                   jax.ShapeDtypeStruct((B, NHp), jnp.float32)),
        grid_spec=pltpu.PrefetchScalarGridSpec(
            num_scalar_prefetch=0,
            grid=(n_bblk, M1),
            in_specs=[
                pl.BlockSpec((1, bblk, Kp), lambda i, m: (m, i, 0)),  # patches
                pl.BlockSpec((Kp, F), lambda i, m: (0, 0)),           # conv_w
                pl.BlockSpec((1, F), lambda i, m: (0, 0)),            # conv_b
                pl.BlockSpec((1, F, Hp), lambda i, m: (m, 0, 0)),     # fc_w[m]
                pl.BlockSpec((1, Hp), lambda i, m: (0, 0)),           # fc_b
                pl.BlockSpec((Hp, NHp), lambda i, m: (0, 0)),         # head_w
                pl.BlockSpec((1, NHp), lambda i, m: (0, 0)),          # head_b
            ],
            out_specs=(
                pl.BlockSpec((bblk, Hp), lambda i, m: (i, 0)),        # feats
                pl.BlockSpec((bblk, NHp), lambda i, m: (i, 0)),       # heads
            ),
            scratch_shapes=[pltpu.VMEM((bblk, Hp), jnp.float32)],     # FC acc
        ),
        compiler_params=pltpu.CompilerParams(
            dimension_semantics=("parallel", "arbitrary"),
            vmem_limit_bytes=16 * 1024 * 1024),
        cost_estimate=pl.CostEstimate(flops=flops, transcendentals=0,
                                      bytes_accessed=bytes_accessed),
    )(patches, p["conv_w"], p["conv_b"], p["fc_w"], p["fc_b"],
      p["head_w"], p["head_b"])

    value = heads[:, :1]                       # critic head
    logits = heads[:, 1:1 + n_actions]         # Categorical dist logits
    feats = feats_p[:, :hidden]                # actor_features
    # dist.mode() for Categorical == argmax over logits (explore=False path).
    action = jnp.argmax(logits, axis=-1)
    # TODO(synk): dist.sample()/log_probs/entropy (explore=True / training
    # path) and the Gaussian (Box) head are not lowered.
    return value, feats, logits, action


# ----------------------------------------------------------------------------
# Pure-JAX f32 reference of the same synthetic base (for a loose sanity check).
# ----------------------------------------------------------------------------
def policy_forward_ref(raw, obs_u8, *, k, stride):
    B, H, W, S, C = obs_u8.shape
    F = raw["conv_w"].shape[0]
    x = obs_u8.astype(jnp.float32) / 255.0
    x = jnp.transpose(x, (0, 4, 3, 1, 2)).reshape(B, C * S, H, W)
    Ho = (H - k) // stride + 1
    Wo = (W - k) // stride + 1
    cols = []
    for i in range(k):
        for j in range(k):
            cols.append(x[:, :, i:i + stride * Ho:stride,
                               j:j + stride * Wo:stride])
    p = jnp.stack(cols, axis=2).reshape(B, C * S * k * k, Ho, Wo)
    p = p.transpose(0, 2, 3, 1).reshape(B * Ho * Wo, C * S * k * k)
    conv = jnp.maximum(p @ raw["conv_w"].reshape(F, -1).T + raw["conv_b"], 0.0)
    feats_in = conv.reshape(B, Ho, Wo, F).transpose(0, 3, 1, 2).reshape(B, -1)
    h = jnp.maximum(feats_in @ raw["fc_w"] + raw["fc_b"], 0.0)
    value = h @ raw["val_w"] + raw["val_b"]
    logits = h @ raw["pi_w"] + raw["pi_b"]
    return value, h, logits


if __name__ == "__main__":
    # Small shapes consistent with the module: B=2, H=W=16, stack=4, C=3.
    B, H, W, S, C = 2, 16, 16, 4, 3
    k, stride, n_filters, hidden, n_actions = 3, 2, 16, 32, 6
    Ho = (H - k) // stride + 1
    Wo = (W - k) // stride + 1
    conv_out_dim = n_filters * Ho * Wo

    key = jax.random.PRNGKey(0)
    k_obs, k_par = jax.random.split(key)
    obs = jax.random.randint(k_obs, (B, H, W, S, C), 0, 256,
                             jnp.int32).astype(jnp.uint8)
    raw = init_params(k_par, C * S, k, n_filters, conv_out_dim,
                      hidden, n_actions)
    params = prepare_params(raw, k=k, S=S, C=C, Ho=Ho, Wo=Wo)  # one-time prep

    fwd = jax.jit(functools.partial(policy_forward, k=k, stride=stride,
                                    hidden=hidden, n_actions=n_actions))
    value, feats, logits, action = fwd(params, obs)
    jax.block_until_ready((value, feats, logits, action))

    assert value.shape == (B, 1)
    assert feats.shape == (B, hidden)
    assert logits.shape == (B, n_actions)
    assert action.shape == (B,)

    # Loose check vs f32 reference (bf16 weight rounding tolerance).
    v_ref, h_ref, l_ref = policy_forward_ref(raw, obs, k=k, stride=stride)
    np.testing.assert_allclose(np.asarray(value), np.asarray(v_ref),
                               rtol=0.1, atol=0.1)
    np.testing.assert_allclose(np.asarray(feats), np.asarray(h_ref),
                               rtol=0.1, atol=0.1)
    np.testing.assert_allclose(np.asarray(logits), np.asarray(l_ref),
                               rtol=0.1, atol=0.1)

    print("KERNEL_OK")
</pallas_src>

<mosaic_0001>
module attributes {stable_mosaic.version = 11 : i64} {
  func.func @_policy_fused_kernel(%arg0: i32, %arg1: i32, %arg2: memref<1x2x128xi8, #tpu.memory_space<vmem>>, %arg3: memref<128x16xbf16, #tpu.memory_space<vmem>>, %arg4: memref<1x16xf32, #tpu.memory_space<vmem>>, %arg5: memref<1x16x128xbf16, #tpu.memory_space<vmem>>, %arg6: memref<1x128xf32, #tpu.memory_space<vmem>>, %arg7: memref<128x128xbf16, #tpu.memory_space<vmem>>, %arg8: memref<1x128xf32, #tpu.memory_space<vmem>>, %arg9: memref<2x128xf32, #tpu.memory_space<vmem>>, %arg10: memref<2x128xf32, #tpu.memory_space<vmem>>, %arg11: memref<2x128xf32, #tpu.memory_space<vmem>>) attributes {dimension_semantics = [#tpu.dimension_semantics<parallel>, #tpu.dimension_semantics<arbitrary>], iteration_bounds = array<i64: 1, 49>, scalar_prefetch = 0 : i64, scratch_operands = 1 : i64, tpu.core_type = #tpu.core_type<tc>, window_params = [{transform_indices = @transform_0, window_bounds = array<i64: 1, 2, 128>}, {pipeline_mode = #tpu.pipeline_mode<synchronous>, transform_indices = @transform_1, window_bounds = array<i64: 128, 16>}, {pipeline_mode = #tpu.pipeline_mode<synchronous>, transform_indices = @transform_2, window_bounds = array<i64: 1, 16>}, {transform_indices = @transform_3, window_bounds = array<i64: 1, 16, 128>}, {pipeline_mode = #tpu.pipeline_mode<synchronous>, transform_indices = @transform_4, window_bounds = array<i64: 1, 128>}, {pipeline_mode = #tpu.pipeline_mode<synchronous>, transform_indices = @transform_5, window_bounds = array<i64: 128, 128>}, {pipeline_mode = #tpu.pipeline_mode<synchronous>, transform_indices = @transform_6, window_bounds = array<i64: 1, 128>}, {transform_indices = @transform_7, window_bounds = array<i64: 2, 128>}, {transform_indices = @transform_8, window_bounds = array<i64: 2, 128>}]} {
    %c0_i32 = arith.constant 0 : i32
    %0 = arith.cmpi eq, %arg1, %c0_i32 : i32
    %1 = arith.extui %0 : i1 to i32
    %c0_i32_0 = arith.constant 0 : i32
    %2 = arith.cmpi ne, %1, %c0_i32_0 : i32
    scf.if %2 {
      %cst_17 = arith.constant 0.000000e+00 : f32
      %23 = vector.broadcast %cst_17 : f32 to vector<2x128xf32>
      %c0_18 = arith.constant 0 : index
      %c0_19 = arith.constant 0 : index
      %24 = vector.load %arg11[%c0_18, %c0_19] : memref<2x128xf32, #tpu.memory_space<vmem>>, vector<2x128xf32>
      tpu.vector_store %arg11[%c0_18, %c0_19], %23 {strides = array<i32>} : memref<2x128xf32, #tpu.memory_space<vmem>>, vector<2x128xf32>,
    } else {
    }
    %c0 = arith.constant 0 : index
    %c0_1 = arith.constant 0 : index
    %c0_2 = arith.constant 0 : index
    %3 = vector.load %arg2[%c0, %c0_1, %c0_2] : memref<1x2x128xi8, #tpu.memory_space<vmem>>, vector<1x2x128xi8>
    %4 = vector.shape_cast %3 : vector<1x2x128xi8> to vector<2x128xi8>
    %5 = arith.sitofp %4 : vector<2x128xi8> to vector<2x128xbf16>
    %c0_3 = arith.constant 0 : index
    %c0_4 = arith.constant 0 : index
    %6 = vector.load %arg3[%c0_3, %c0_4] : memref<128x16xbf16, #tpu.memory_space<vmem>>, vector<128x16xbf16>
    %cst = arith.constant dense<0.000000e+00> : vector<2x16xf32>
    %7 = tpu.matmul %5, %6, %cst {dimension_numbers = #tpu.dot_dimension_numbers<[1], [0], [0], [1], [0, 0, 1, 1], [], []>} : vector<2x128xbf16>, vector<128x16xbf16>, vector<2x16xf32> -> vector<2x16xf32>
    %c0_5 = arith.constant 0 : index
    %c0_6 = arith.constant 0 : index
    %8 = vector.load %arg4[%c0_5, %c0_6] : memref<1x16xf32, #tpu.memory_space<vmem>>, vector<1x16xf32>
    %9 = vector.broadcast %8 : vector<1x16xf32> to vector<2x16xf32>
    %10 = arith.addf %7, %9 : vector<2x16xf32>
    %cst_7 = arith.constant 0.000000e+00 : f32
    %11 = vector.broadcast %cst_7 : f32 to vector<2x16xf32>
    %12 = arith.maximumf %10, %11 : vector<2x16xf32>
    %c0_8 = arith.constant 0 : index
    %c0_9 = arith.constant 0 : index
    %13 = vector.load %arg11[%c0_8, %c0_9] : memref<2x128xf32, #tpu.memory_space<vmem>>, vector<2x128xf32>
    %14 = arith.truncf %12 : vector<2x16xf32> to vector<2x16xbf16>
    %c0_10 = arith.constant 0 : index
    %c0_11 = arith.constant 0 : index
    %c0_12 = arith.constant 0 : index
    %15 = vector.load %arg5[%c0_10, %c0_11, %c0_12] : memref<1x16x128xbf16, #tpu.memory_space<vmem>>, vector<1x16x128xbf16>
    %16 = vector.shape_cast %15 : vector<1x16x128xbf16> to vector<16x128xbf16>
    %cst_13 = arith.constant dense<0.000000e+00> : vector<2x128xf32>
    %17 = tpu.matmul %14, %16, %cst_13 {dimension_numbers = #tpu.dot_dimension_numbers<[1], [0], [0], [1], [0, 0, 1, 1], [], []>} : vector<2x16xbf16>, vector<16x128xbf16>, vector<2x128xf32> -> vector<2x128xf32>
    %18 = arith.addf %13, %17 : vector<2x128xf32>
    %c0_14 = arith.constant 0 : index
    %c0_15 = arith.constant 0 : index
    %19 = vector.load %arg11[%c0_14, %c0_15] : memref<2x128xf32, #tpu.memory_space<vmem>>, vector<2x128xf32>
    tpu.vector_store %arg11[%c0_14, %c0_15], %18 {strides = array<i32>} : memref<2x128xf32, #tpu.memory_space<vmem>>, vector<2x128xf32>,
    %c48_i32 = arith.constant 48 : i32
    %20 = arith.cmpi eq, %arg1, %c48_i32 : i32
    %21 = arith.extui %20 : i1 to i32
    %c0_i32_16 = arith.constant 0 : i32
    %22 = arith.cmpi ne, %21, %c0_i32_16 : i32
    scf.if %22 {
      %c0_17 = arith.constant 0 : index
      %c0_18 = arith.constant 0 : index
      %23 = vector.load %arg11[%c0_17, %c0_18] : memref<2x128xf32, #tpu.memory_space<vmem>>, vector<2x128xf32>
      %c0_19 = arith.constant 0 : index
      %c0_20 = arith.constant 0 : index
      %24 = vector.load %arg6[%c0_19, %c0_20] : memref<1x128xf32, #tpu.memory_space<vmem>>, vector<1x128xf32>
      %25 = vector.broadcast %24 : vector<1x128xf32> to vector<2x128xf32>
      %26 = arith.addf %23, %25 : vector<2x128xf32>
      %cst_21 = arith.constant 0.000000e+00 : f32
      %27 = vector.broadcast %cst_21 : f32 to vector<2x128xf32>
      %28 = arith.maximumf %26, %27 : vector<2x128xf32>
      %c0_22 = arith.constant 0 : index
      %c0_23 = arith.constant 0 : index
      %29 = vector.load %arg9[%c0_22, %c0_23] : memref<2x128xf32, #tpu.memory_space<vmem>>, vector<2x128xf32>
      tpu.vector_store %arg9[%c0_22, %c0_23], %28 {strides = array<i32>} : memref<2x128xf32, #tpu.memory_space<vmem>>, vector<2x128xf32>,
      %30 = arith.truncf %28 : vector<2x128xf32> to vector<2x128xbf16>
      %c0_24 = arith.constant 0 : index
      %c0_25 = arith.constant 0 : index
      %31 = vector.load %arg7[%c0_24, %c0_25] : memref<128x128xbf16, #tpu.memory_space<vmem>>, vector<128x128xbf16>
      %cst_26 = arith.constant dense<0.000000e+00> : vector<2x128xf32>
      %32 = tpu.matmul %30, %31, %cst_26 {dimension_numbers = #tpu.dot_dimension_numbers<[1], [0], [0], [1], [0, 0, 1, 1], [], []>} : vector<2x128xbf16>, vector<128x128xbf16>, vector<2x128xf32> -> vector<2x128xf32>
      %c0_27 = arith.constant 0 : index
      %c0_28 = arith.constant 0 : index
      %33 = vector.load %arg8[%c0_27, %c0_28] : memref<1x128xf32, #tpu.memory_space<vmem>>, vector<1x128xf32>
      %34 = vector.broadcast %33 : vector<1x128xf32> to vector<2x128xf32>
      %35 = arith.addf %32, %34 : vector<2x128xf32>
      %c0_29 = arith.constant 0 : index
      %c0_30 = arith.constant 0 : index
      %36 = vector.load %arg10[%c0_29, %c0_30] : memref<2x128xf32, #tpu.memory_space<vmem>>, vector<2x128xf32>
      tpu.vector_store %arg10[%c0_29, %c0_30], %35 {strides = array<i32>} : memref<2x128xf32, #tpu.memory_space<vmem>>, vector<2x128xf32>,
    } else {
    }
    return
  }
  func.func @transform_0(%arg0: i32, %arg1: i32) -> (i32, i32, i32) {
    %c0_i32 = arith.constant 0 : i32
    %c0_i32_0 = arith.constant 0 : i32
    return %arg1, %arg0, %c0_i32 : i32, i32, i32
  }
  func.func @transform_1(%arg0: i32, %arg1: i32) -> (i32, i32) {
    %c0_i32 = arith.constant 0 : i32
    %c0_i32_0 = arith.constant 0 : i32
    %c0_i32_1 = arith.constant 0 : i32
    return %c0_i32, %c0_i32_0 : i32, i32
  }
  func.func @transform_2(%arg0: i32, %arg1: i32) -> (i32, i32) {
    %c0_i32 = arith.constant 0 : i32
    %c0_i32_0 = arith.constant 0 : i32
    %c0_i32_1 = arith.constant 0 : i32
    return %c0_i32, %c0_i32_0 : i32, i32
  }
  func.func @transform_3(%arg0: i32, %arg1: i32) -> (i32, i32, i32) {
    %c0_i32 = arith.constant 0 : i32
    %c0_i32_0 = arith.constant 0 : i32
    %c0_i32_1 = arith.constant 0 : i32
    return %arg1, %c0_i32, %c0_i32_0 : i32, i32, i32
  }
  func.func @transform_4(%arg0: i32, %arg1: i32) -> (i32, i32) {
    %c0_i32 = arith.constant 0 : i32
    %c0_i32_0 = arith.constant 0 : i32
    %c0_i32_1 = arith.constant 0 : i32
    return %c0_i32, %c0_i32_0 : i32, i32
  }
  func.func @transform_5(%arg0: i32, %arg1: i32) -> (i32, i32) {
    %c0_i32 = arith.constant 0 : i32
    %c0_i32_0 = arith.constant 0 : i32
    %c0_i32_1 = arith.constant 0 : i32
    return %c0_i32, %c0_i32_0 : i32, i32
  }
  func.func @transform_6(%arg0: i32, %arg1: i32) -> (i32, i32) {
    %c0_i32 = arith.constant 0 : i32
    %c0_i32_0 = arith.constant 0 : i32
    %c0_i32_1 = arith.constant 0 : i32
    return %c0_i32, %c0_i32_0 : i32, i32
  }
  func.func @transform_7(%arg0: i32, %arg1: i32) -> (i32, i32) {
    %c0_i32 = arith.constant 0 : i32
    %c0_i32_0 = arith.constant 0 : i32
    return %arg0, %c0_i32 : i32, i32
  }
  func.func @transform_8(%arg0: i32, %arg1: i32) -> (i32, i32) {
    %c0_i32 = arith.constant 0 : i32
    %c0_i32_0 = arith.constant 0 : i32
    return %arg0, %c0_i32 : i32, i32
  }
}

</mosaic_0001>

<bundles_post_ra>
// kernel: policy_forward.1
= control target key start
LH: loop header
LB: loop body
LE: loop exit
PB: predicated region body
PF: predicated region fallthrough
CT: control target
= control target key end

     0   :  { %14 = vsyncpa [#allocation4], 0  ;;  %s1007_s27 = smov 0   ;;  %s1009_s28 = smov 0   ;;  %s1147_s0 = inlined_call_operand.vmem [shape: s8[49,2,128], index: 0, kind: input, shape index: {}]   ;;  %s1148_s1 = inlined_call_operand.vmem [shape: bf16[128,16], index: 1, kind: input, shape index: {}]   ;;  %s1149_s2 = inlined_call_operand.vmem [shape: f32[1,16], index: 2, kind: input, shape index: {}]   ;;  %s1150_s3 = inlined_call_operand.vmem [shape: bf16[49,16,128], index: 3, kind: input, shape index: {}]   ;;  %s1151_s4 = inlined_call_operand.vmem [shape: f32[1,128], index: 4, kind: input, shape index: {}]   ;;  %s1152_s5 = inlined_call_operand.vmem [shape: bf16[128,128], index: 5, kind: input, shape index: {}]   ;;  %s1153_s6 = inlined_call_operand.vmem [shape: f32[1,128], index: 6, kind: input, shape index: {}]   ;;  %s1154_s7 = inlined_call_operand.hbm [shape: f32[2,128], index: 7, kind: output, shape index: {0}]   ;;  %s1155_s8 = inlined_call_operand.vmem [shape: f32[2,128], index: 8, kind: output, shape index: {1}]  }
   0x1   :  { %s1011_s29 = smov 0  }
   0x2 LB: > { %s748_s30 = sadd.s32 4294967295, %s954_s29   ;;  %s29_s9 = sadd.s32 1, %s950_s28  ;;  %s954_s29 = sphi %s1011_s29, %s20_s29   ;;  %s950_s28 = sphi %s1009_s28, %s1158_s28   ;;  %s946_s27 = sphi %s1007_s27, %s1157_s27  }
   0x3   : > { %p30_p0 = scmp.ge.s32.totalorder %s29_s9, 49  ;;  %p751_p1 = scmp.ge.s32.totalorder %s954_s29, 1 }
   0x4   : > { %p291_p2 = scmp.lt.s32.totalorder %s954_s29, 50 }
   0x5   : > { %s1160_s9 = smov (%p30_p0, %s29_s9), 0 }
   0x6   : > { %p292_p3 = pnand %p751_p1, %p291_p2 }
   0x7   : > { %p330_p4 = scmp.lt.s32.totalorder (!%p292_p3), %s946_s27, 48  ;;  %p754_p5 = scmp.ne.s32.totalorder (!%p292_p3), %s946_s27, 0 }
   0x8   : > { %295 = sbr.rel (%p292_p3) target bundleno = 742 (0x2e6), region = 48 }
   0xf   : > { %s1030_s10 = scalar_select %p330_p4, %s946_s27, 48 }
  0x10   : > { %349 = sbr.rel (%p754_p5) target bundleno = 23 (0x17), region = 52  ;;  %v956_v0 = vmov (!%p754_p5), 0.0  }
  0x11   : > { %s335_s13 = scalar_lea.vmem %s1147_s0, %s1030_s10  ;;  %s782_s14 = sshll.u32 %s1030_s10, 3  ;;  %350 = vst [vmem:[#allocation2] sm:$0x3] (!%p754_p5), %v956_v0 }
  0x12   : > { %s1040_s17 = scalar_lea.vmem %s1150_s3, %s782_s14 }
  0x17 PF: > { %v885_v1 = vld [vmem:[%s1148_s1] sm:$0xff]   ;;  %v957_v2 = vmov 0.0   ;;  %v886_v3 = vld [vmem:[%s1148_s1 + $0x8] sm:$0xff]   ;;  %vm958_vm0 = vmmov 0   ;;  %v887_v4 = vld [vmem:[%s1148_s1 + $0x10] sm:$0xff]   ;;  %vm475_vm1 = vcmask 130048  }
  0x18   : > { %803 = vmatprep.subr.bf16.mxu0 %v957_v2  ;;  %823 = vmatprep.subr.bf16.mxu1 %v957_v2  ;;  %v888_v5 = vld [vmem:[%s1148_s1 + $0x18] sm:$0xff]   ;;  %v889_v6 = vld [vmem:[%s1148_s1 + $0x20] sm:$0xff]   ;;  %v890_v7 = vld [vmem:[%s1148_s1 + $0x28] sm:$0xff]   ;;  %p766_p6 = scmp.ne.s32.totalorder %s946_s27, 48 }
  0x19   : > { %804 = vmatpush3.bf16.msra.mxu0 %v885_v1  ;;  %819 = vmatprep.mubr.msk.bf16.mxu0 %vm958_vm0, %v957_v2  ;;  %v891_v8 = vld [vmem:[%s1148_s1 + $0x30] sm:$0xff]   ;;  %v892_v9 = vld [vmem:[%s1148_s1 + $0x38] sm:$0xff]   ;;  %v351_v10 = vld [vmem:[%s335_s13] sm:$0x1]  ;;  %v959_v28 = vmov (!%p766_p6), 0.0   ;;  %vm960_vm2 = vmmov (!%p766_p6), 0  }
  0x1a   : > { %805 = vmatprep.subr.bf16.mxu0 %v957_v2  ;;  %825 = vmatprep.mubr.msk.bf16.mxu1 %vm958_vm0, %v957_v2  ;;  %v352_v11 = vunpack.c.l.s8.bf16 %v351_v10  ;;  %v893_v12 = vld [vmem:[%s1040_s17] sm:$0xff]   ;;  %v895_v29 = vld [vmem:[%s1152_s5 + $0x8] sm:$0xff] (!%p766_p6)   ;;  %v896_v30 = vld [vmem:[%s1152_s5 + $0x10] sm:$0xff] (!%p766_p6)  }
  0x1b   : > { %824 = vmatpush3.bf16.msra.mxu1 %v893_v12  ;;  %v755_v13 = vld [vmem:[%s1149_s2] ss:$0 sm:$0xff]  ;;  %v897_v34 = vld [vmem:[%s1152_s5 + $0x18] sm:$0xff] (!%p766_p6)   ;;  %v899_v37 = vld [vmem:[%s1152_s5 + $0x28] sm:$0xff] (!%p766_p6)  }
  0x1c   : > { %v465_v21 = vld [vmem:[#allocation2] sm:$0x3]  ;;  %v900_v38 = vld [vmem:[%s1152_s5 + $0x30] sm:$0xff] (!%p766_p6)   ;;  %v901_v39 = vld [vmem:[%s1152_s5 + $0x38] sm:$0xff] (!%p766_p6)  }
  0x1d   : > { %806 = vmatpush3.bf16.msra.mxu0 %v886_v3  ;;  %v894_v27 = vld [vmem:[%s1152_s5] sm:$0xff] (!%p766_p6)  }
  0x1e   : > { %807 = vmatprep.subr.bf16.mxu0 %v957_v2  ;;  %v767_v32 = vld [vmem:[%s1151_s4] ss:$0 sm:$0xff] (!%p766_p6) }
  0x1f   : > { %v898_v36 = vld [vmem:[%s1152_s5 + $0x20] sm:$0xff] (!%p766_p6)  }
  0x20   : > { %v768_v41 = vld [vmem:[%s1153_s6] ss:$0 sm:$0xff] (!%p766_p6) }
  0x21   : > { %808 = vmatpush3.bf16.msra.mxu0 %v887_v4 }
  0x22   : > { %809 = vmatprep.subr.bf16.mxu0 %v957_v2 }
  0x25   : > { %810 = vmatpush3.bf16.msra.mxu0 %v888_v5 }
  0x26   : > { %811 = vmatprep.subr.bf16.mxu0 %v957_v2 }
  0x29   : > { %812 = vmatpush3.bf16.msra.mxu0 %v889_v6 }
  0x2a   : > { %813 = vmatprep.subr.bf16.mxu0 %v957_v2 }
  0x2d   : > { %814 = vmatpush3.bf16.msra.mxu0 %v890_v7 }
  0x2e   : > { %815 = vmatprep.subr.bf16.mxu0 %v957_v2 }
  0x31   : > { %816 = vmatpush3.bf16.msra.mxu0 %v891_v8 }
  0x32   : > { %817 = vmatprep.subr.bf16.mxu0 %v957_v2 }
  0x35   : > { %818 = vmatpush3.bf16.msra.mxu0 %v892_v9 }
  0x36   : > { %829 = vmatprep.subr.bf16.mxu0 (!%p766_p6), %v959_v28 }
  0x38   : > { %820 = vmatmul.mubr.bf16.vlgmr.msra.gmra.mrb[0].mxu0 %v352_v11 }
  0x39   : > { %830 = vmatpush3.bf16.msra.mxu0 (!%p766_p6), %v894_v27  ;;  %845 = vmatprep.mubr.msk.bf16.mxu0 (!%p766_p6), %vm960_vm2, %v959_v28 }
  0x3a   : > { %831 = vmatprep.subr.bf16.mxu0 (!%p766_p6), %v959_v28 }
  0x3d   : > { %832 = vmatpush3.bf16.msra.mxu0 (!%p766_p6), %v895_v29 }
  0x3e   : > { %833 = vmatprep.subr.bf16.mxu0 (!%p766_p6), %v959_v28 }
  0x41   : > { %834 = vmatpush3.bf16.msra.mxu0 (!%p766_p6), %v896_v30 }
  0x42   : > { %835 = vmatprep.subr.bf16.mxu0 (!%p766_p6), %v959_v28 }
  0x45   : > { %836 = vmatpush3.bf16.msra.mxu0 (!%p766_p6), %v897_v34 }
  0x46   : > { %837 = vmatprep.subr.bf16.mxu0 (!%p766_p6), %v959_v28 }
  0x49   : > { %838 = vmatpush3.bf16.msra.mxu0 (!%p766_p6), %v898_v36 }
  0x4a   : > { %839 = vmatprep.subr.bf16.mxu0 (!%p766_p6), %v959_v28 }
  0x4d   : > { %840 = vmatpush3.bf16.msra.mxu0 (!%p766_p6), %v899_v37 }
  0x4e   : > { %841 = vmatprep.subr.bf16.mxu0 (!%p766_p6), %v959_v28 }
  0x51   : > { %842 = vmatpush3.bf16.msra.mxu0 (!%p766_p6), %v900_v38 }
  0x52   : > { %843 = vmatprep.subr.bf16.mxu0 (!%p766_p6), %v959_v28 }
  0x55   : > { %844 = vmatpush3.bf16.msra.mxu0 (!%p766_p6), %v901_v39 }
 0x10b   : > { %v458_v14 = vpop.f32.mrb[0].mxu0 }
 0x10c   : > { %v459_v15 = vadd.f32 %v755_v13, %v458_v14  ;;  %v821_v16 = vpop.f32.mrb[1].mxu0 }
 0x10d   : > { %v461_v17 = vpop.f32.mrb[2].mxu0 }
 0x10e   : > { %v464_v18 = vmax.f32 %v459_v15, 0.0  ;;  %v822_v19 = vpop.f32.mrb[3].mxu0 }
 0x110   : > { %v466_v20 = vpack.c.bf16 %v464_v18, %v464_v18 }
 0x112   : > { %826 = vmatmul.mubr.msk.bf16.vlgmr.msra.gmra.mrb[0].mxu1 %vm475_vm1, %v466_v20 }
 0x1e2   : > { %524 = sbr.rel (%p766_p6) target bundleno = 717 (0x2cd), region = 56 }
 0x1e5   : > { %v513_v22 = vpop.f32.mrb[0].mxu1 }
 0x1e6   : > { %v519_v23 = vadd.f32 %v513_v22, %v465_v21  ;;  %v827_v24 = vpop.f32.mrb[1].mxu1 }
 0x1e7   : > { %v516_v25 = vpop.f32.mrb[2].mxu1 }
 0x1e8   : > { %520 = vst [vmem:[#allocation2] sm:$0x3] %v519_v23  ;;  %v828_v26 = vpop.f32.mrb[3].mxu1 }
 0x1ef   : > { %v525_v31 = vld [vmem:[#allocation2] sm:$0x3] }
 0x1f0   : > { %v533_v33 = vadd.f32 %v767_v32, %v525_v31 }
 0x1f2   : > { %v534_v35 = vmax.f32 %v533_v33, 0.0 }
 0x1f4   : > { %535 = vst [vmem:[#allocation3] sm:$0x3] %v534_v35  ;;  %v536_v40 = vpack.c.bf16 %v534_v35, %v534_v35 }
 0x1f6   : > { %846 = vmatmul.mubr.bf16.vlgmr.msra.gmra.mrb[0].mxu0 %v536_v40 }
 0x2c9   : > { %v642_v42 = vpop.f32.mrb[0].mxu0 }
 0x2ca   : > { %v643_v43 = vadd.f32 %v768_v41, %v642_v42  ;;  %v847_v44 = vpop.f32.mrb[1].mxu0 }
 0x2cb   : > { %v645_v45 = vpop.f32.mrb[2].mxu0 }
 0x2cc   : > { %648 = vst [vmem:[%s1155_s8] sm:$0x3] %v643_v43  ;;  %v848_v46 = vpop.f32.mrb[3].mxu0 }
 0x2cd PF: > { %p1112_p7 = scmp.eq.s32.totalorder %s748_s30, 48  ;;  %s961_s26 = smov [#allocation3]  }
 0x2ce   : > { %s662_s27 = sshll.u32 %s961_s26, 4  ;;  %s663_s27 = int_to_ptr.vmem [resolvable:$true] %s662_s27 }
 0x2cf   : > { %s902_s11 = scalar_lea.vmem %s663_s27, 32  ;;  %p909_p11 = scmp.lt.s32.totalorder %s663_s27, %s663_s27 }
 0x2d0   : > { %p903_p8 = scmp.ne.s32.totalorder %s663_s27, %s902_s11  ;;  %p910_p12 = scmp.lt.s32.totalorder %s902_s11, %s902_s11 }
 0x2d2   : > { %p904_p9 = pnand %p903_p8, %p1112_p7  ;;  %p911_p13 = por %p910_p12, %p909_p11 }
 0x2d4   : > { %p905_p10 = pneg %p904_p9 }
 0x2d6   : > { %p912_p0 = pnand %p911_p13, %p905_p10 }
 0x2d8   : > { %915 = shalt.err (!%p912_p0)
}
 0x2d9   : > { %s916_s30 = scalar_lea.hbm %s1154_s7, 32 }
 0x2da   : > { %p917_p1 = scmp.ne.s32.totalorder %s1154_s7, %s916_s30  ;;  %p922_p4 = scmp.lt.u32.totalorder %s916_s30, %s1154_s7 }
 0x2dc   : > { %p918_p2 = pnand %p917_p1, %p1112_p7 }
 0x2de   : > { %p919_p3 = pneg %p918_p2 }
 0x2e0   : > { %p924_p5 = pnand %p922_p4, %p919_p3 }
 0x2e2   : > { %927 = shalt.err (!%p924_p5)
}
 0x2e3   : > { %850 = dma.vmem_to_hbm [thread:$0]  (%p1112_p7), %s663_s27, 32, %s1154_s7, [#allocation4]  }
 0x2e4   : > { %941 = dma.done.wait (%p1112_p7), [#allocation4], 32  }
 0x2e5   : > { %943 = vsyncadd (%p1112_p7), [#allocation4], 4294967264 }
 0x2e6 PF: > { %s20_s29 = sadd.s32 1, %s954_s29   ;;  %s1157_s27 = smov %s950_s28 }
 0x2e7   : > { %p17_p6 = scmp.ge.s32.totalorder %s20_s29, 51   ;;  %s1158_s28 = smov %s1160_s9 }
 0x2e9   :  { %19 = sbr.rel (!%p17_p6) target bundleno = 2 (0x2), region = 99 }
 0x2f0   :  { %685 = vsyncpa [#allocation4], 1 }
 0x2f1   :  { %687 = vsyncpa [#allocation4 + $0x1], 1 }

</bundles_post_ra>
